<compile_context>
chip_gen: v7x
topology: tpu7x:2x2x1
jax: 0.10.0
libtpu: 0.0.40
codegen_flags: <defaults>
</compile_context>

<pallas_src>
import functools

import jax
import jax.numpy as jnp
from jax.experimental import pallas as pl
from jax.experimental.pallas import tpu as pltpu


def _round_up(x: int, m: int) -> int:
    return ((x + m - 1) // m) * m


def _round_down(x: int, m: int) -> int:
    return (x // m) * m


def _mean_last_axis_kernel(x_ref, o_ref, *, reduce_len: int):
    # x_ref: (TR, L) tile of the (R, L) slab; reduce over the lane axis.
    # Accumulate in f32 directly in the reduce (no full-tile f32 copy in
    # vregs); scale by the trace-time constant 1/L.
    s = jnp.sum(x_ref[...], axis=-1, keepdims=True, dtype=jnp.float32)
    o_ref[...] = (s * (1.0 / reduce_len)).astype(o_ref.dtype)


def _vmem_capacity_bytes() -> int:
    try:
        return int(pltpu.get_tpu_info().vmem_capacity_bytes)
    except Exception:
        return 64 * 1024 * 1024  # conservative fallback: v7x physical VMEM


def spatial_mean(x: jax.Array) -> jax.Array:
    """torch.mean(x, dim=(2, 3)) for an NCHW tensor, via a Pallas kernel."""
    N, C, H, W = x.shape
    R = N * C
    L = H * W
    itemsize = jnp.dtype(x.dtype).itemsize

    x2d = x.reshape(R, L)  # contiguous reshape: no extra HBM copy

    # Sublane granularity so the row tile stays packed:
    # f32 -> 8, bf16 -> 16, int8/fp8 -> 32.
    g = 8 * max(1, 4 // itemsize)

    # VMEM budget (generation aware): ~75% of physical as the scoped limit,
    # ~2/3 of that for the double-buffered input tiles, the rest for the
    # (tiny) output buffers + compiler scratch.
    vmem_cap = _vmem_capacity_bytes()
    vmem_limit = (vmem_cap * 3) // 4
    per_buffer_budget = vmem_limit // 3

    # Largest row tile that fits the per-buffer budget (lane dim padded to a
    # multiple of 128 in VMEM), rounded to the sublane granularity, capped at
    # 2048 rows (diminishing returns past ~1024) and at the array size.
    row_bytes = _round_up(L, 128) * itemsize
    tr = _round_down(per_buffer_budget // row_bytes, g)
    tr = max(g, min(tr, 2048, _round_up(R, g)))

    # Keep >= 2 grid steps on big inputs so v7x megacore can shard rows.
    num_blocks = -(-R // tr)
    if num_blocks < 2 and R > 2 * g:
        tr = _round_up(-(-R // 2), g)
        num_blocks = -(-R // tr)

    grid = (num_blocks,)

    # Advisory cost hint: one read of the slab, a tiny write, L-1 adds per row.
    cost = pl.CostEstimate(
        flops=R * L,
        transcendentals=0,
        bytes_accessed=R * L * itemsize + R * itemsize,
    )

    out = pl.pallas_call(
        functools.partial(_mean_last_axis_kernel, reduce_len=L),
        out_shape=jax.ShapeDtypeStruct((R, 1), x.dtype),
        grid_spec=pltpu.PrefetchScalarGridSpec(
            num_scalar_prefetch=0,
            grid=grid,
            in_specs=[pl.BlockSpec((tr, L), lambda i: (i, 0))],
            out_specs=pl.BlockSpec((tr, 1), lambda i: (i, 0)),
        ),
        compiler_params=pltpu.CompilerParams(
            dimension_semantics=("parallel",),
            vmem_limit_bytes=vmem_limit,
        ),
        cost_estimate=cost,
    )(x2d)

    return out[:, 0].reshape(N, C)


if __name__ == "__main__":
    key = jax.random.PRNGKey(0)
    x = jax.random.normal(key, (2, 4, 16, 16), dtype=jnp.float32)

    y = spatial_mean(x)
    jax.block_until_ready(y)

    # Reference check against plain JAX (== torch.mean(x, dim=(2, 3)))
    y_ref = jnp.mean(x, axis=(2, 3))
    assert y.shape == (2, 4)
    assert jnp.allclose(y, y_ref, atol=1e-5, rtol=1e-5)

    print("KERNEL_OK")
</pallas_src>

<mosaic_0001>
module attributes {stable_mosaic.version = 11 : i64} {
  func.func @_mean_last_axis_kernel(%arg0: i32, %arg1: memref<8x256xf32, #tpu.memory_space<vmem>>, %arg2: memref<8x1xf32, #tpu.memory_space<vmem>>) attributes {dimension_semantics = [#tpu.dimension_semantics<parallel>], iteration_bounds = array<i64: 1>, scalar_prefetch = 0 : i64, scratch_operands = 0 : i64, tpu.core_type = #tpu.core_type<tc>, window_params = [{transform_indices = @transform_0, window_bounds = array<i64: 8, 256>}, {transform_indices = @transform_1, window_bounds = array<i64: 8, 1>}]} {
    %c0 = arith.constant 0 : index
    %c0_0 = arith.constant 0 : index
    %0 = vector.load %arg1[%c0, %c0_0] : memref<8x256xf32, #tpu.memory_space<vmem>>, vector<8x256xf32>
    %cst = arith.constant dense<0.000000e+00> : vector<8xf32>
    %1 = vector.multi_reduction <add>, %0, %cst [1] : vector<8x256xf32> to vector<8xf32>
    %2 = vector.shape_cast %1 : vector<8xf32> to vector<8x1xf32>
    %cst_1 = arith.constant 3.906250e-03 : f32
    %3 = vector.broadcast %cst_1 : f32 to vector<8x1xf32>
    %4 = arith.mulf %2, %3 : vector<8x1xf32>
    %c0_2 = arith.constant 0 : index
    %c0_3 = arith.constant 0 : index
    %5 = vector.load %arg2[%c0_2, %c0_3] : memref<8x1xf32, #tpu.memory_space<vmem>>, vector<8x1xf32>
    tpu.vector_store %arg2[%c0_2, %c0_3], %4 {strides = array<i32>} : memref<8x1xf32, #tpu.memory_space<vmem>>, vector<8x1xf32>,
    return
  }
  func.func @transform_0(%arg0: i32) -> (i32, i32) {
    %c0_i32 = arith.constant 0 : i32
    %c0_i32_0 = arith.constant 0 : i32
    return %arg0, %c0_i32 : i32, i32
  }
  func.func @transform_1(%arg0: i32) -> (i32, i32) {
    %c0_i32 = arith.constant 0 : i32
    %c0_i32_0 = arith.constant 0 : i32
    return %arg0, %c0_i32 : i32, i32
  }
}

</mosaic_0001>

<bundles_post_ra>
// kernel: tpu_custom_call.1
= control target key start
LH: loop header
LB: loop body
LE: loop exit
PB: predicated region body
PF: predicated region fallthrough
CT: control target
= control target key end

     0   :  { %6 = vsyncpa [#allocation3], 0  ;;  %s58_s6 = smov [#allocation2]   ;;  %s84_s0 = inlined_call_operand.hbm [shape: f32[8,256], index: 0, kind: input, shape index: {}]   ;;  %s85_s1 = inlined_call_operand.vmem [shape: f32[8,1], index: 1, kind: output, shape index: {}]  }
   0x1   :  { %s13_s7 = sshll.u32 %s58_s6, 4  ;;  %s34_s10 = scalar_lea.hbm %s84_s0, 256  ;;  %s14_s7 = int_to_ptr.vmem [resolvable:$true] %s13_s7 }
   0x2   :  { %p35_p0 = scmp.ne.s32.totalorder %s84_s0, %s34_s10  ;;  %p38_p1 = scmp.lt.u32.totalorder %s34_s10, %s84_s0 }
   0x4   :  { %p40_p2 = pnand %p38_p1, %p35_p0 }
   0x6   :  { %43 = shalt.err (!%p40_p2)
}
   0x7   :  { %s44_s15 = scalar_lea.vmem %s14_s7, 256  ;;  %p49_p4 = scmp.lt.s32.totalorder %s14_s7, %s14_s7 }
   0x8   :  { %p45_p3 = scmp.ne.s32.totalorder %s14_s7, %s44_s15  ;;  %p50_p5 = scmp.lt.s32.totalorder %s44_s15, %s44_s15 }
   0xa   :  { %p51_p6 = por %p50_p5, %p49_p4 }
   0xc   :  { %p52_p7 = pnand %p51_p6, %p45_p3 }
   0xe   :  { %55 = shalt.err (!%p52_p7)
}
   0xf   :  { %16 = dma.hbm_to_vmem [thread:$0]  %s84_s0, 256, %s14_s7, [#allocation3]  }
  0x10   :  { %56 = dma.done.wait [#allocation3], 256  }
  0x11   :  { %57 = vsyncadd [#allocation3], 4294967040  ;;  %v20_v0 = vld [vmem:[#allocation2] sm:$0xff]  ;;  %v21_v1 = vld [vmem:[#allocation2 + $0x8] sm:$0xff]  ;;  %vm26_vm0 = vcmask 7168  }
  0x12   :  { %v22_v2 = vadd.f32 %v21_v1, %v20_v0 }
  0x14   :  { %23 = vadd.xlane.f32.xlu0 %v22_v2 }
  0xa1   :  { %v24_v3 = vpop.xlane.xlu0 %23 }
  0xa2   :  { %v25_v4 = vmul.f32 0.00390625, %v24_v3 }
  0xa4   :  { %27 = vst.msk [vmem:[%s85_s1] sm:$0xff] %vm26_vm0, %v25_v4 }
  0xa5   :  { %32 = vsyncpa [#allocation3], 1 }

</bundles_post_ra>
